<compile_context>
chip_gen: v6e
topology: v6e:2x2x1
jax: 0.10.0
libtpu: 0.0.40
codegen_flags: <defaults>
</compile_context>

<pallas_src>
from functools import partial

import jax
import jax.numpy as jnp
from jax import lax
from jax.experimental import pallas as pl
from jax.experimental.pallas import tpu as pltpu

_LANES = 128


def blob_affine_kernel(x_ref, w_ref, b_ref, o_ref):
    """One batch tile of the fused affine  y = x @ W + B.

    x_ref : (F, bt, 128) VMEM block  (batch packed into sublanes x lanes)
    w_ref : (F, C) float32 in SMEM,  b_ref : (C,) float32 in SMEM
    o_ref : (C, bt, 128) VMEM block
    """
    f, bt, _ = x_ref.shape
    c = o_ref.shape[0]

    # Hoist all weights / biases out of the loop as SMEM scalar reads.
    wv = [[w_ref[i, j] for j in range(c)] for i in range(f)]
    bv = [b_ref[j] for j in range(c)]

    # Largest sublane sub-tile height dividing bt: keeps live values to
    # ~(F + 1) * sub/8 vregs << 64, so nothing spills out of the vreg file.
    sub = bt
    for cand in (64, 32, 16, 8):
        if bt % cand == 0:
            sub = cand
            break
    n_sub = bt // sub

    def body(s, carry):
        r = s * sub
        xs = [x_ref[i, pl.ds(r, sub), :] for i in range(f)]   # f x (sub, 128)
        for j in range(c):
            acc = xs[0] * wv[0][j]                             # scalar * tile
            for i in range(1, f):
                acc = acc + xs[i] * wv[i][j]
            o_ref[j, pl.ds(r, sub), :] = acc + bv[j]
        return carry

    # Fully unrolled (static trip count): LLO sees straight-line code, but
    # each sub-tile's values die at its store, bounding vreg pressure.
    lax.fori_loop(0, n_sub, body, 0, unroll=True)


def fuse_blob_params(w1, b1, w2, b2, w3, b3):
    """Collapse the three activation-free linears into one (F,C) affine."""
    w = w1 @ w2 @ w3                       # (F, C)   ~100 floats of work
    b = (b1 @ w2 + b2) @ w3 + b3           # (C,)
    return w, b


def _affine_fm_impl(x_fm, w, b, *, block_rows=512):
    """Feature-major fused affine: (F, N) -> (C, N), N % 128 == 0."""
    f, n = x_fm.shape
    c = w.shape[1]
    assert n % _LANES == 0, "feature-major fast path needs N % 128 == 0"
    g = n // _LANES                        # sublane-tile rows of the batch

    # Block size: big enough to amortize per-step overhead, (8,128)-legal.
    bt = block_rows if g >= block_rows else g          # small batch: full extent
    if bt != g and bt % 8 != 0:
        bt = max(8, (bt // 8) * 8)
    grid = (pl.cdiv(g, bt),)               # ragged last block is masked by Pallas

    xt = x_fm.reshape(f, g, _LANES)        # contiguous reshape, no copy

    # Explicit VMEM budget: double-buffered in+out blocks + headroom,
    # capped under v7x's 64 MiB physical VMEM.
    block_bytes = (f + c) * bt * _LANES * 4
    vmem_limit = int(min(max(4 * block_bytes + (4 << 20), 16 << 20), 64 << 20))

    smem = pl.BlockSpec(memory_space=pltpu.MemorySpace.SMEM)
    out = pl.pallas_call(
        blob_affine_kernel,
        out_shape=jax.ShapeDtypeStruct((c, g, _LANES), jnp.float32),
        grid=grid,
        in_specs=[
            pl.BlockSpec((f, bt, _LANES), lambda t: (0, t, 0)),   # streamed x
            smem,                                                 # fused W
            smem,                                                 # fused B
        ],
        out_specs=pl.BlockSpec((c, bt, _LANES), lambda t: (0, t, 0)),
        compiler_params=pltpu.CompilerParams(
            dimension_semantics=("parallel",),
            vmem_limit_bytes=vmem_limit,
        ),
    )(xt, w, b)
    return out.reshape(c, n)


# Fast path for callers that keep feature-major activations (no transposes).
blob_affine_fm = jax.jit(_affine_fm_impl, static_argnames=("block_rows",))


@partial(jax.jit, static_argnames=("block_rows",))
def blob_model_forward(x, w1, b1, w2, b2, w3, b3, *, block_rows=512):
    """Forward pass of BlobModel: ((x @ w1 + b1) @ w2 + b2) @ w3 + b3.

    x : (N, F) float32  ->  (N, C) float32   (PyTorch nn.Linear convention).
    """
    n, _ = x.shape
    w, b = fuse_blob_params(w1, b1, w2, b2, w3, b3)    # tiny, fused by XLA
    n_pad = int(pl.cdiv(n, _LANES)) * _LANES
    # Single pad + transpose copy to the feature-major layout the kernel wants.
    x_fm = jnp.pad(x, ((0, n_pad - n), (0, 0))).T       # (F, n_pad)
    y_fm = _affine_fm_impl(x_fm, w, b, block_rows=block_rows)   # (C, n_pad)
    # TODO(synk): callers that can keep feature-major activations should use
    # blob_affine_fm directly and skip both transposes (they are the only
    # remaining non-kernel HBM traffic).
    return y_fm.T[:n]


def init_params(key, in_features=2, hidden_units=8, output_features=4):
    # PyTorch nn.Linear default init: U(-1/sqrt(fan_in), 1/sqrt(fan_in)).
    ks = jax.random.split(key, 6)

    def linear(kw, kb, fan_in, fan_out):
        bound = float(fan_in) ** -0.5
        w = jax.random.uniform(kw, (fan_in, fan_out), jnp.float32, -bound, bound)
        b = jax.random.uniform(kb, (fan_out,), jnp.float32, -bound, bound)
        return w, b

    w1, b1 = linear(ks[0], ks[1], in_features, hidden_units)
    w2, b2 = linear(ks[2], ks[3], hidden_units, hidden_units)
    w3, b3 = linear(ks[4], ks[5], hidden_units, output_features)
    return w1, b1, w2, b2, w3, b3


if __name__ == "__main__":
    key = jax.random.PRNGKey(0)
    kx1, kx2, kp = jax.random.split(key, 3)

    # BlobModel defaults from the tutorial: NUM_FEATURES=2, NUM_CLASSES=4, hidden=8.
    params = init_params(kp, in_features=2, hidden_units=8, output_features=4)

    def ref_fwd(x, w1, b1, w2, b2, w3, b3):
        return ((x @ w1 + b1) @ w2 + b2) @ w3 + b3

    # Small batch: single full-extent block (g = 1 sublane-tile).
    x_small = jax.random.normal(kx1, (32, 2), jnp.float32)
    out_small = jax.block_until_ready(blob_model_forward(x_small, *params))
    assert out_small.shape == (32, 4)
    assert jnp.allclose(out_small, ref_fwd(x_small, *params), atol=1e-4, rtol=1e-4)

    # Non-multiple batch, default big tile: g = 17 < 512 -> one full-extent block.
    x_big = jax.random.normal(kx2, (2053, 2), jnp.float32)
    out_big = jax.block_until_ready(blob_model_forward(x_big, *params))
    assert out_big.shape == (2053, 4)
    assert jnp.allclose(out_big, ref_fwd(x_big, *params), atol=1e-4, rtol=1e-4)

    # Force a multi-step grid with a ragged (masked) last block:
    # g = 17, bt = 8 -> grid (3,), last block only 1 of 8 rows valid.
    out_multi = jax.block_until_ready(
        blob_model_forward(x_big, *params, block_rows=8))
    assert jnp.allclose(out_multi, ref_fwd(x_big, *params), atol=1e-4, rtol=1e-4)

    # Feature-major fast path: caller owns the layout, no wrapper transposes.
    w_f, b_f = fuse_blob_params(*params)
    n_pad = int(pl.cdiv(2053, _LANES)) * _LANES
    x_fm = jnp.pad(x_big, ((0, n_pad - 2053), (0, 0))).T          # (2, 2176)
    y_fm = jax.block_until_ready(blob_affine_fm(x_fm, w_f, b_f))  # (4, 2176)
    assert jnp.allclose(y_fm.T[:2053], ref_fwd(x_big, *params),
                        atol=1e-4, rtol=1e-4)

    print("KERNEL_OK")
</pallas_src>

<mosaic_0001>
module attributes {stable_mosaic.version = 11 : i64} {
  func.func @blob_affine_kernel(%arg0: i32, %arg1: memref<2x1x128xf32, #tpu.memory_space<vmem>>, %arg2: memref<2x4xf32, #tpu.memory_space<smem>>, %arg3: memref<4xf32, #tpu.memory_space<smem>>, %arg4: memref<4x1x128xf32, #tpu.memory_space<vmem>>) attributes {dimension_semantics = [#tpu.dimension_semantics<parallel>], iteration_bounds = array<i64: 1>, scalar_prefetch = 0 : i64, scratch_operands = 0 : i64, tpu.core_type = #tpu.core_type<tc>, window_params = [{transform_indices = @transform_0, window_bounds = array<i64: 2, 1, 128>}, {transform_indices = @transform_1, window_bounds = array<i64: 2, 4>}, {transform_indices = @transform_2, window_bounds = array<i64: 4>}, {transform_indices = @transform_3, window_bounds = array<i64: 4, 1, 128>}]} {
    %c0 = arith.constant 0 : index
    %c0_0 = arith.constant 0 : index
    %0 = memref.load %arg2[%c0, %c0_0] : memref<2x4xf32, #tpu.memory_space<smem>>
    %c0_1 = arith.constant 0 : index
    %c1 = arith.constant 1 : index
    %1 = memref.load %arg2[%c0_1, %c1] : memref<2x4xf32, #tpu.memory_space<smem>>
    %c0_2 = arith.constant 0 : index
    %c2 = arith.constant 2 : index
    %2 = memref.load %arg2[%c0_2, %c2] : memref<2x4xf32, #tpu.memory_space<smem>>
    %c0_3 = arith.constant 0 : index
    %c3 = arith.constant 3 : index
    %3 = memref.load %arg2[%c0_3, %c3] : memref<2x4xf32, #tpu.memory_space<smem>>
    %c1_4 = arith.constant 1 : index
    %c0_5 = arith.constant 0 : index
    %4 = memref.load %arg2[%c1_4, %c0_5] : memref<2x4xf32, #tpu.memory_space<smem>>
    %c1_6 = arith.constant 1 : index
    %c1_7 = arith.constant 1 : index
    %5 = memref.load %arg2[%c1_6, %c1_7] : memref<2x4xf32, #tpu.memory_space<smem>>
    %c1_8 = arith.constant 1 : index
    %c2_9 = arith.constant 2 : index
    %6 = memref.load %arg2[%c1_8, %c2_9] : memref<2x4xf32, #tpu.memory_space<smem>>
    %c1_10 = arith.constant 1 : index
    %c3_11 = arith.constant 3 : index
    %7 = memref.load %arg2[%c1_10, %c3_11] : memref<2x4xf32, #tpu.memory_space<smem>>
    %c0_12 = arith.constant 0 : index
    %8 = memref.load %arg3[%c0_12] : memref<4xf32, #tpu.memory_space<smem>>
    %c1_13 = arith.constant 1 : index
    %9 = memref.load %arg3[%c1_13] : memref<4xf32, #tpu.memory_space<smem>>
    %c2_14 = arith.constant 2 : index
    %10 = memref.load %arg3[%c2_14] : memref<4xf32, #tpu.memory_space<smem>>
    %c3_15 = arith.constant 3 : index
    %11 = memref.load %arg3[%c3_15] : memref<4xf32, #tpu.memory_space<smem>>
    %c0_i32 = arith.constant 0 : i32
    %c1_i32 = arith.constant 1 : i32
    %12 = arith.muli %c0_i32, %c1_i32 : i32
    %c0_16 = arith.constant 0 : index
    %13 = arith.index_cast %12 : i32 to index
    %c0_17 = arith.constant 0 : index
    %14 = vector.load %arg1[%c0_16, %13, %c0_17] : memref<2x1x128xf32, #tpu.memory_space<vmem>>, vector<1x1x128xf32>
    %15 = vector.shape_cast %14 : vector<1x1x128xf32> to vector<1x128xf32>
    %c1_18 = arith.constant 1 : index
    %16 = arith.index_cast %12 : i32 to index
    %c0_19 = arith.constant 0 : index
    %17 = vector.load %arg1[%c1_18, %16, %c0_19] : memref<2x1x128xf32, #tpu.memory_space<vmem>>, vector<1x1x128xf32>
    %18 = vector.shape_cast %17 : vector<1x1x128xf32> to vector<1x128xf32>
    %19 = vector.broadcast %0 : f32 to vector<1x128xf32>
    %20 = arith.mulf %15, %19 : vector<1x128xf32>
    %21 = vector.broadcast %4 : f32 to vector<1x128xf32>
    %22 = arith.mulf %18, %21 : vector<1x128xf32>
    %23 = arith.addf %20, %22 : vector<1x128xf32>
    %24 = vector.broadcast %8 : f32 to vector<1x128xf32>
    %25 = arith.addf %23, %24 : vector<1x128xf32>
    %c0_20 = arith.constant 0 : index
    %26 = arith.index_cast %12 : i32 to index
    %c0_21 = arith.constant 0 : index
    %27 = vector.load %arg4[%c0_20, %26, %c0_21] : memref<4x1x128xf32, #tpu.memory_space<vmem>>, vector<1x1x128xf32>
    %28 = vector.shape_cast %27 : vector<1x1x128xf32> to vector<1x128xf32>
    %29 = vector.shape_cast %25 : vector<1x128xf32> to vector<1x1x128xf32>
    tpu.vector_store %arg4[%c0_20, %26, %c0_21], %29 {strides = array<i32>} : memref<4x1x128xf32, #tpu.memory_space<vmem>>, vector<1x1x128xf32>,
    %30 = vector.broadcast %1 : f32 to vector<1x128xf32>
    %31 = arith.mulf %15, %30 : vector<1x128xf32>
    %32 = vector.broadcast %5 : f32 to vector<1x128xf32>
    %33 = arith.mulf %18, %32 : vector<1x128xf32>
    %34 = arith.addf %31, %33 : vector<1x128xf32>
    %35 = vector.broadcast %9 : f32 to vector<1x128xf32>
    %36 = arith.addf %34, %35 : vector<1x128xf32>
    %c1_22 = arith.constant 1 : index
    %37 = arith.index_cast %12 : i32 to index
    %c0_23 = arith.constant 0 : index
    %38 = vector.load %arg4[%c1_22, %37, %c0_23] : memref<4x1x128xf32, #tpu.memory_space<vmem>>, vector<1x1x128xf32>
    %39 = vector.shape_cast %38 : vector<1x1x128xf32> to vector<1x128xf32>
    %40 = vector.shape_cast %36 : vector<1x128xf32> to vector<1x1x128xf32>
    tpu.vector_store %arg4[%c1_22, %37, %c0_23], %40 {strides = array<i32>} : memref<4x1x128xf32, #tpu.memory_space<vmem>>, vector<1x1x128xf32>,
    %41 = vector.broadcast %2 : f32 to vector<1x128xf32>
    %42 = arith.mulf %15, %41 : vector<1x128xf32>
    %43 = vector.broadcast %6 : f32 to vector<1x128xf32>
    %44 = arith.mulf %18, %43 : vector<1x128xf32>
    %45 = arith.addf %42, %44 : vector<1x128xf32>
    %46 = vector.broadcast %10 : f32 to vector<1x128xf32>
    %47 = arith.addf %45, %46 : vector<1x128xf32>
    %c2_24 = arith.constant 2 : index
    %48 = arith.index_cast %12 : i32 to index
    %c0_25 = arith.constant 0 : index
    %49 = vector.load %arg4[%c2_24, %48, %c0_25] : memref<4x1x128xf32, #tpu.memory_space<vmem>>, vector<1x1x128xf32>
    %50 = vector.shape_cast %49 : vector<1x1x128xf32> to vector<1x128xf32>
    %51 = vector.shape_cast %47 : vector<1x128xf32> to vector<1x1x128xf32>
    tpu.vector_store %arg4[%c2_24, %48, %c0_25], %51 {strides = array<i32>} : memref<4x1x128xf32, #tpu.memory_space<vmem>>, vector<1x1x128xf32>,
    %52 = vector.broadcast %3 : f32 to vector<1x128xf32>
    %53 = arith.mulf %15, %52 : vector<1x128xf32>
    %54 = vector.broadcast %7 : f32 to vector<1x128xf32>
    %55 = arith.mulf %18, %54 : vector<1x128xf32>
    %56 = arith.addf %53, %55 : vector<1x128xf32>
    %57 = vector.broadcast %11 : f32 to vector<1x128xf32>
    %58 = arith.addf %56, %57 : vector<1x128xf32>
    %c3_26 = arith.constant 3 : index
    %59 = arith.index_cast %12 : i32 to index
    %c0_27 = arith.constant 0 : index
    %60 = vector.load %arg4[%c3_26, %59, %c0_27] : memref<4x1x128xf32, #tpu.memory_space<vmem>>, vector<1x1x128xf32>
    %61 = vector.shape_cast %60 : vector<1x1x128xf32> to vector<1x128xf32>
    %62 = vector.shape_cast %58 : vector<1x128xf32> to vector<1x1x128xf32>
    tpu.vector_store %arg4[%c3_26, %59, %c0_27], %62 {strides = array<i32>} : memref<4x1x128xf32, #tpu.memory_space<vmem>>, vector<1x1x128xf32>,
    %c1_i32_28 = arith.constant 1 : i32
    return
  }
  func.func @transform_0(%arg0: i32) -> (i32, i32, i32) {
    %c0_i32 = arith.constant 0 : i32
    %c0_i32_0 = arith.constant 0 : i32
    %c0_i32_1 = arith.constant 0 : i32
    return %c0_i32, %arg0, %c0_i32_0 : i32, i32, i32
  }
  func.func @transform_1(%arg0: i32) -> (i32, i32) {
    %c0_i32 = arith.constant 0 : i32
    %c0_i32_0 = arith.constant 0 : i32
    %c0_i32_1 = arith.constant 0 : i32
    return %c0_i32, %c0_i32_0 : i32, i32
  }
  func.func @transform_2(%arg0: i32) -> i32 {
    %c0_i32 = arith.constant 0 : i32
    %c0_i32_0 = arith.constant 0 : i32
    return %c0_i32 : i32
  }
  func.func @transform_3(%arg0: i32) -> (i32, i32, i32) {
    %c0_i32 = arith.constant 0 : i32
    %c0_i32_0 = arith.constant 0 : i32
    %c0_i32_1 = arith.constant 0 : i32
    return %c0_i32, %arg0, %c0_i32_0 : i32, i32, i32
  }
}

</mosaic_0001>

<bundles_post_ra>
// kernel: blob_model_forward.1
= control target key start
LH: loop header
LB: loop body
LE: loop exit
PB: predicated region body
PF: predicated region fallthrough
CT: control target
= control target key end

     0   :  { %8 = vsyncpa [#allocation4], 0  ;;  %s214_s0 = inlined_call_operand.vmem [shape: f32[2,1,128], index: 0, kind: input, shape index: {}]   ;;  %s215_s1 = inlined_call_operand.vmem [shape: f32[2,4], index: 1, kind: input, shape index: {}]   ;;  %s216_s2 = inlined_call_operand.vmem [shape: f32[4], index: 2, kind: input, shape index: {}]   ;;  %s217_s3 = inlined_call_operand.hbm [shape: f32[4,1,128], index: 3, kind: output, shape index: {}]  }
   0x1   :  { %9 = vsyncpa [#allocation6], 0 }
   0x2   :  { %10 = vsyncpa [#allocation3], 0  ;;  %s19_s14 = sshll.u32 %s215_s1, 4  ;;  %s29_s17 = sshll.u32 %s216_s2, 4  ;;  %s20_s14 = int_to_ptr.vmem [resolvable:$true] %s19_s14  ;;  %s30_s17 = int_to_ptr.vmem [resolvable:$true] %s29_s17 }
   0x3   :  { %s124_s18 = scalar_lea.vmem %s20_s14, 32  ;;  %p129_p1 = scmp.lt.s32.totalorder %s20_s14, %s20_s14 }
   0x4   :  { %p125_p0 = scmp.ne.s32.totalorder %s20_s14, %s124_s18  ;;  %p130_p2 = scmp.lt.s32.totalorder %s124_s18, %s124_s18 }
   0x6   :  { %p131_p3 = por %p130_p2, %p129_p1 }
   0x8   :  { %p132_p4 = pnand %p131_p3, %p125_p0 }
   0xa   :  { %135 = shalt.err (!%p132_p4)
}
   0xb   :  { %s174_s19 = smov [#allocation2]   ;;  %s136_s20 = scalar_lea.vmem %s30_s17, 16 }
   0xc   :  { %22 = dma.vmem_to_smem %s20_s14, 32, %s174_s19, [#allocation4]  }
   0xd   :  { %p137_p5 = scmp.ne.s32.totalorder %s30_s17, %s136_s20  ;;  %p141_p6 = scmp.lt.s32.totalorder %s30_s17, %s30_s17 }
   0xe   :  { %p142_p7 = scmp.lt.s32.totalorder %s136_s20, %s136_s20 }
  0x10   :  { %p143_p8 = por %p142_p7, %p141_p6 }
  0x12   :  { %p144_p9 = pnand %p143_p8, %p137_p5 }
  0x14   :  { %147 = shalt.err (!%p144_p9)
}
  0x15   :  { %s175_s1 = smov [#allocation5]  }
  0x16   :  { %32 = dma.vmem_to_smem %s30_s17, 16, %s175_s1, [#allocation6]  }
  0x17   :  { %168 = dma.done.wait [#allocation4], 32  }
  0x18   :  { %169 = vsyncadd [#allocation4], 4294967264 }
  0x19   :  { %170 = dma.done.wait [#allocation6], 16  }
  0x1a   :  { %171 = vsyncadd [#allocation6], 4294967280 }
  0x1b   :  { %39 = sfence }
  0x1c   :  { %s40_s2 = sld [smem:[#allocation2]]  ;;  %v52_v0 = vld [vmem:[%s214_s0] sm:$0x1]  ;;  %v118_v1 = vld [vmem:[%s214_s0 + $0x1] sm:$0x1]  ;;  %s176_s0 = smov [#allocation7]  }
  0x1d   :  { %s111_s21 = sld [smem:[#allocation2 + $0x80]]  ;;  %s95_s9 = sshll.u32 %s176_s0, 4  ;;  %s96_s9 = int_to_ptr.vmem [resolvable:$true] %s95_s9 }
  0x1e   :  { %s48_s22 = sld [smem:[#allocation5]]  ;;  %s148_s10 = scalar_lea.vmem %s96_s9, 64 }
  0x1f   :  { %s108_s23 = sld [smem:[#allocation2 + $0x1]]  ;;  %p149_p10 = scmp.ne.s32.totalorder %s96_s9, %s148_s10 }
  0x20   :  { %s112_s26 = sld [smem:[#allocation2 + $0x81]]  ;;  %p153_p11 = scmp.lt.s32.totalorder %s96_s9, %s96_s9 }
  0x21   :  { %s115_s29 = sld [smem:[#allocation5 + $0x1]]  ;;  %p154_p12 = scmp.lt.s32.totalorder %s148_s10, %s148_s10 }
  0x22   :  { %v55_v2 = vstv %s40_s2  ;;  %s109_s30 = sld [smem:[#allocation2 + $0x2]] }
  0x23   :  { %v56_v3 = vmul.f32 %v55_v2, %v52_v0  ;;  %v57_v4 = vstv %s111_s21  ;;  %s113_s4 = sld [smem:[#allocation2 + $0x82]]  ;;  %p155_p13 = por %p154_p12, %p153_p11 }
  0x24   :  { %v58_v5 = vmul.f32 %v118_v1, %v57_v4  ;;  %s116_s5 = sld [smem:[#allocation5 + $0x2]]  ;;  %v60_v6 = vstv %s48_s22 }
  0x25   :  { %v63_v7 = vstv %s108_s23  ;;  %s110_s6 = sld [smem:[#allocation2 + $0x3]]  ;;  %p156_p0 = pnand %p155_p13, %p149_p10 }
  0x26   :  { %v59_v8 = vadd.f32 %v58_v5, %v56_v3  ;;  %v64_v9 = vmul.f32 %v63_v7, %v52_v0  ;;  %v65_v10 = vstv %s112_s26  ;;  %s114_s7 = sld [smem:[#allocation2 + $0x83]] }
  0x27   :  { %v66_v11 = vmul.f32 %v118_v1, %v65_v10  ;;  %s117_s8 = sld [smem:[#allocation5 + $0x3]]  ;;  %v68_v13 = vstv %s115_s29 }
  0x28   :  { %v61_v12 = vadd.f32 %v60_v6, %v59_v8  ;;  %v72_v14 = vstv %s109_s30 }
  0x29   :  { %v67_v15 = vadd.f32 %v66_v11, %v64_v9  ;;  %v73_v16 = vmul.f32 %v72_v14, %v52_v0  ;;  %v74_v17 = vstv %s113_s4 }
  0x2a   :  { %62 = vst [vmem:[#allocation7] sm:$0x1] %v61_v12  ;;  %v75_v18 = vmul.f32 %v118_v1, %v74_v17  ;;  %v77_v20 = vstv %s116_s5 }
  0x2b   :  { %v69_v19 = vadd.f32 %v68_v13, %v67_v15  ;;  %v81_v21 = vstv %s110_s6 }
  0x2c   :  { %v76_v22 = vadd.f32 %v75_v18, %v73_v16  ;;  %v82_v23 = vmul.f32 %v81_v21, %v52_v0  ;;  %v83_v24 = vstv %s114_s7 }
  0x2d   :  { %71 = vst [vmem:[#allocation7 + $0x1] sm:$0x1] %v69_v19  ;;  %v84_v25 = vmul.f32 %v118_v1, %v83_v24  ;;  %v86_v27 = vstv %s117_s8 }
  0x2e   :  { %v78_v26 = vadd.f32 %v77_v20, %v76_v22 }
  0x2f   :  { %v85_v28 = vadd.f32 %v84_v25, %v82_v23 }
  0x30   :  { %80 = vst [vmem:[#allocation7 + $0x2] sm:$0x1] %v78_v26 }
  0x31   :  { %v87_v29 = vadd.f32 %v86_v27, %v85_v28 }
  0x33   :  { %89 = vst [vmem:[#allocation7 + $0x3] sm:$0x1] %v87_v29 }
  0x34   :  { %159 = shalt.err (!%p156_p0)
}
  0x35   :  { %s177_s11 = smov 16   ;;  %s178_s12 = smov 1  }
  0x36   :  { %101 = dma.vmem_to_hbm [thread:$0]  %s96_s9, 64, %s217_s3, [#allocation3], %s177_s11, %s177_s11, %s178_s12  }
  0x37   :  { %172 = dma.done.wait [#allocation3], 64  }
  0x38   :  { %173 = vsyncadd [#allocation3], 4294967232 }
  0x39   :  { %105 = vsyncpa [#allocation3], 1 }
  0x3a   :  { %106 = vsyncpa [#allocation4], 1 }
  0x3b   :  { %107 = vsyncpa [#allocation6], 1 }

</bundles_post_ra>
